<compile_context>
chip_gen: v6e
topology: v6e:2x2x1
jax: 0.10.0
libtpu: 0.0.40
codegen_flags: <defaults>
</compile_context>

<pallas_src>
import jax
import jax.numpy as jnp
from jax.experimental import pallas as pl
from jax.experimental.pallas import tpu as pltpu


def _vmem_limit_bytes() -> int:
    """~3/4 of physical VMEM: ~96 MiB on v5e/v6e, ~48 MiB on v7x."""
    cap = 64 * 1024 * 1024  # conservative default (v7x per-TC VMEM)
    try:
        cap = int(pltpu.get_tpu_info().vmem_capacity_bytes)
    except Exception:
        pass
    return (cap * 3) // 4


def _sigmoid_f32(g):
    # sigmoid(g) == 0.5 * (tanh(0.5 * g) + 1): a single EUP transcendental.
    return 0.5 * (jnp.tanh(0.5 * g) + 1.0)


def _glu_kernel_split(x_ref, g_ref, o_ref):
    # x_ref / g_ref / o_ref all share the same lane-dense (tr, th) tile shape.
    x = x_ref[...].astype(jnp.float32)
    g = g_ref[...].astype(jnp.float32)
    o_ref[...] = (x * _sigmoid_f32(g)).astype(o_ref.dtype)


def _glu_kernel_fused(x2_ref, o_ref):
    # Fallback: x2_ref tile is (tr, 2H); split along the lane axis in-kernel.
    h = o_ref.shape[-1]
    blk = x2_ref[...].astype(jnp.float32)
    o_ref[...] = (blk[..., :h] * _sigmoid_f32(blk[..., h:])).astype(o_ref.dtype)


def _largest_dividing_col_tile(h: int, cap: int) -> int:
    """Largest multiple of 128 that divides h and is <= cap (>=128)."""
    cand = min(h, max(128, cap))
    cand = (cand // 128) * 128
    while cand > 128:
        if h % cand == 0:
            return cand
        cand -= 128
    return 128


def _row_tile(rows: int, target: int) -> int:
    """Row tile: full extent if it fits the target, else a multiple of 8."""
    target = max(8, target)
    if rows <= target:
        return rows  # full-extent blocks are always layout legal
    return max(8, (target // 8) * 8)


def _shrink_rows_for_min_steps(rows: int, tr: int, col_blocks: int,
                               min_steps: int = 4) -> int:
    """Shrink the row tile until the grid has a few steps (pipelining/megacore)."""
    while pl.cdiv(rows, tr) * col_blocks < min_steps and rows > 8:
        new_tr = max(8, ((tr // 2) // 8) * 8)
        if new_tr == tr:
            break
        tr = new_tr
    return tr


def _shrink_cols_for_min_steps(h: int, th: int, row_blocks: int,
                               min_steps: int = 4) -> int:
    """Halve the column tile (staying a 128-multiple divisor of h) if needed."""
    while row_blocks * (h // th) < min_steps and th > 128 and th % 256 == 0:
        th //= 2
    return th


def glu(x: jax.Array) -> jax.Array:
    """GLU along the last dim: x[..., :H] * sigmoid(x[..., H:])."""
    *lead, d2 = x.shape
    assert d2 % 2 == 0, "last dim must be even for chunk(2, dim=-1)"
    h = d2 // 2

    rows = 1
    for d in lead:
        rows *= d
    x2d = x.reshape(rows, d2)  # free row-major reshape

    dbytes = jnp.dtype(x.dtype).itemsize
    vmem_limit = _vmem_limit_bytes()
    # 2 double-buffered input tiles + 1 double-buffered output tile = 6 live
    # buffers -> ~1/12 of the VMEM limit per tile (4 MiB v7x / 8 MiB v5e,v6e).
    tile_bytes = vmem_limit // 12
    elem_budget = max(tile_bytes // dbytes, 8 * 128)

    cost = pl.CostEstimate(
        flops=4 * rows * h,
        transcendentals=rows * h,
        bytes_accessed=3 * rows * h * dbytes,
    )

    if h % 128 == 0:
        # Fast path: chunk(2) as two column-offset BlockSpecs over the same
        # array -> the split is a DMA offset and every tile is lane dense.
        th = _largest_dividing_col_tile(h, elem_budget // 8)
        tr = _row_tile(rows, elem_budget // th)
        tr = _shrink_rows_for_min_steps(rows, tr, h // th)
        row_blocks = pl.cdiv(rows, tr)
        th = _shrink_cols_for_min_steps(h, th, row_blocks)
        h_blocks = h // th

        out2d = pl.pallas_call(
            _glu_kernel_split,
            out_shape=jax.ShapeDtypeStruct((rows, h), x.dtype),
            grid_spec=pl.GridSpec(
                grid=(row_blocks, h_blocks),
                in_specs=[
                    pl.BlockSpec((tr, th), lambda r, c: (r, c)),
                    pl.BlockSpec((tr, th), lambda r, c: (r, c + h_blocks)),
                ],
                out_specs=pl.BlockSpec((tr, th), lambda r, c: (r, c)),
            ),
            compiler_params=pltpu.CompilerParams(
                dimension_semantics=("parallel", "parallel"),
                vmem_limit_bytes=vmem_limit,
            ),
            cost_estimate=cost,
        )(x2d, x2d)
    else:
        # Fallback for non-128-aligned H (smoke-test sizes): full-width
        # (tr, 2H) blocks (full-extent dims are always layout legal), split
        # in-kernel.  Narrow output stores are fine at these tiny widths.
        tr = _row_tile(rows, elem_budget // d2)
        tr = _shrink_rows_for_min_steps(rows, tr, 1)
        row_blocks = pl.cdiv(rows, tr)

        out2d = pl.pallas_call(
            _glu_kernel_fused,
            out_shape=jax.ShapeDtypeStruct((rows, h), x.dtype),
            grid_spec=pl.GridSpec(
                grid=(row_blocks,),
                in_specs=[pl.BlockSpec((tr, d2), lambda r: (r, 0))],
                out_specs=pl.BlockSpec((tr, h), lambda r: (r, 0)),
            ),
            compiler_params=pltpu.CompilerParams(
                dimension_semantics=("parallel",),
                vmem_limit_bytes=vmem_limit,
            ),
            cost_estimate=cost,
        )(x2d)

    return out2d.reshape(*lead, h)


def _reference(x):
    x_half, gate = jnp.split(x, 2, axis=-1)
    return x_half * jax.nn.sigmoid(gate)


if __name__ == "__main__":
    key = jax.random.PRNGKey(0)
    k1, k2, k3 = jax.random.split(key, 3)

    # Module-consistent small shape (batch=2, seq=8, hidden=32) -> fallback path.
    B, S, H = 2, 8, 32
    x_small = jax.random.normal(k1, (B, S, 2 * H), dtype=jnp.float32)
    out_small = jax.block_until_ready(glu(x_small))
    assert out_small.shape == (B, S, H)
    assert jnp.allclose(out_small, _reference(x_small), atol=1e-5, rtol=1e-5)

    # 128-aligned hidden -> fast DMA-offset-split path.
    H2 = 128
    x_aligned = jax.random.normal(k2, (B, S, 2 * H2), dtype=jnp.float32)
    out_aligned = jax.block_until_ready(glu(x_aligned))
    assert out_aligned.shape == (B, S, H2)
    assert jnp.allclose(out_aligned, _reference(x_aligned), atol=1e-5, rtol=1e-5)

    # bf16 fast path (exercises dtype-aware tiling); dtype-aware tolerance.
    x_bf16 = jax.random.normal(k3, (B, S, 2 * H2), dtype=jnp.bfloat16)
    out_bf16 = jax.block_until_ready(glu(x_bf16))
    ref_bf16 = _reference(x_bf16.astype(jnp.float32))
    assert out_bf16.shape == (B, S, H2)
    assert jnp.allclose(out_bf16.astype(jnp.float32), ref_bf16,
                        atol=2e-2, rtol=2e-2)

    print("KERNEL_OK")
</pallas_src>

<mosaic_0001>
module attributes {stable_mosaic.version = 11 : i64} {
  func.func @_glu_kernel_fused(%arg0: i32, %arg1: memref<8x64xf32, #tpu.memory_space<vmem>>, %arg2: memref<8x32xf32, #tpu.memory_space<vmem>>) attributes {dimension_semantics = [#tpu.dimension_semantics<parallel>], iteration_bounds = array<i64: 2>, scalar_prefetch = 0 : i64, scratch_operands = 0 : i64, tpu.core_type = #tpu.core_type<tc>, window_params = [{transform_indices = @transform_0, window_bounds = array<i64: 8, 64>}, {transform_indices = @transform_1, window_bounds = array<i64: 8, 32>}]} {
    %c0 = arith.constant 0 : index
    %c0_0 = arith.constant 0 : index
    %0 = vector.load %arg1[%c0, %c0_0] : memref<8x64xf32, #tpu.memory_space<vmem>>, vector<8x64xf32>
    %1 = vector.extract_strided_slice %0 {offsets = [0, 0], sizes = [8, 32], strides = [1, 1]} : vector<8x64xf32> to vector<8x32xf32>
    %2 = vector.extract_strided_slice %0 {offsets = [0, 32], sizes = [8, 32], strides = [1, 1]} : vector<8x64xf32> to vector<8x32xf32>
    %cst = arith.constant 5.000000e-01 : f32
    %3 = vector.broadcast %cst : f32 to vector<8x32xf32>
    %4 = arith.mulf %3, %2 : vector<8x32xf32>
    %5 = math.tanh %4 : vector<8x32xf32>
    %cst_1 = arith.constant 1.000000e+00 : f32
    %6 = vector.broadcast %cst_1 : f32 to vector<8x32xf32>
    %7 = arith.addf %5, %6 : vector<8x32xf32>
    %cst_2 = arith.constant 5.000000e-01 : f32
    %8 = vector.broadcast %cst_2 : f32 to vector<8x32xf32>
    %9 = arith.mulf %8, %7 : vector<8x32xf32>
    %10 = arith.mulf %1, %9 : vector<8x32xf32>
    %c0_3 = arith.constant 0 : index
    %c0_4 = arith.constant 0 : index
    %11 = vector.load %arg2[%c0_3, %c0_4] : memref<8x32xf32, #tpu.memory_space<vmem>>, vector<8x32xf32>
    tpu.vector_store %arg2[%c0_3, %c0_4], %10 {strides = array<i32>} : memref<8x32xf32, #tpu.memory_space<vmem>>, vector<8x32xf32>,
    return
  }
  func.func @transform_0(%arg0: i32) -> (i32, i32) {
    %c0_i32 = arith.constant 0 : i32
    %c0_i32_0 = arith.constant 0 : i32
    return %arg0, %c0_i32 : i32, i32
  }
  func.func @transform_1(%arg0: i32) -> (i32, i32) {
    %c0_i32 = arith.constant 0 : i32
    %c0_i32_0 = arith.constant 0 : i32
    return %arg0, %c0_i32 : i32, i32
  }
}

</mosaic_0001>

<bundles_post_ra>
// kernel: tpu_custom_call.1
= control target key start
LH: loop header
LB: loop body
LE: loop exit
PB: predicated region body
PF: predicated region fallthrough
CT: control target
= control target key end

     0   :  { %6 = vsyncpa [#allocation3], 0  ;;  %s537_s0 = inlined_call_operand.hbm [shape: f32[16,64], index: 0, kind: input, shape index: {}]   ;;  %s538_s1 = inlined_call_operand.hbm [shape: f32[16,32], index: 1, kind: output, shape index: {}]  }
   0x1   :  { %8 = vsyncpa [#allocation3 + $0x1], 0 }
   0x2   :  { %9 = vsyncpa [#allocation4], 0 }
   0x3   :  { %11 = vsyncpa [#allocation4 + $0x1], 0  ;;  %s396_s6 = smov 0   ;;  %s398_s7 = smov 0  }
   0x4   :  { %s400_s8 = smov 0   ;;  %s402_s9 = smov 0  }
   0x5 LB: > { %s417_s10 = sadd.s32 4294967295, %s381_s9   ;;  %s228_s11 = sadd.s32 4294967294, %s381_s9   ;;  %s381_s9 = sphi %s402_s9, %s555_s9   ;;  %s377_s8 = sphi %s400_s8, %s554_s8   ;;  %s373_s7 = sphi %s398_s7, %s553_s7   ;;  %s369_s6 = sphi %s396_s6, %s552_s6  }
   0x6   : > { %s421_s12 = sadd.s32 1, %s381_s9   ;;  %s24_s13 = sadd.s32 1, %s377_s8 }
   0x7   : > { %s21_s14 = ssub.s32 %s381_s9, %s421_s12  ;;  %p31_p0 = scmp.ne.s32.totalorder %s377_s8, %s373_s7 }
   0x8   : > { %p22_p1 = scmp.eq.s32.totalorder %s21_s14, 0  ;;  %p32_p2 = scmp.eq.s32.totalorder %s381_s9, 0 }
   0x9   : > { %p37_p3 = scmp.ne.s32.totalorder %s373_s7, %s369_s6  ;;  %p38_p4 = scmp.eq.s32.totalorder %s417_s10, 0 }
   0xa   : > { %s433_s15 = scalar_select %p22_p1, %s377_s8, %s24_s13  }
   0xb   : > { %p435_p5 = por %p32_p2, %p31_p0  ;;  %p439_p6 = por %p38_p4, %p37_p3 }
   0xc   : > { %p61_p7 = scmp.eq.s32.totalorder %s417_s10, 1  ;;  %p67_p8 = scmp.eq.s32.totalorder %s228_s11, 1 }
   0xd   : > { %s542_s17 = scalar_select %p439_p6, 1, 0 }
   0xe   : > { %p252_p10 = scmp.lt.s32.totalorder %s381_s9, 2  ;;  %p446_p11 = por %p61_p7, %p31_p0 }
   0xf   : > { %p450_p12 = por %p67_p8, %p37_p3  ;;  %s87_s20 = sand.u32 1, %s377_s8  }
  0x10   : > { %s543_s18 = scalar_select %p446_p11, 1, 0 }
  0x11   : > { %s544_s19 = scalar_select %p450_p12, 1, 0 }
  0x12   : > { %s232_s21 = sshll.u32 %s381_s9, 7  ;;  %s231_s22 = sshll.u32 %s87_s20, 3 }
  0x13   : > { %s459_s25 = scalar_lea.hbm %s537_s0, %s232_s21  ;;  %s91_s26 = scalar_lea.vmem [#allocation2], %s231_s22 }
  0x14   : > { %s98_s27 = sshll.u32 %s91_s26, 4  ;;  %p463_p13 = pnand %p252_p10, %p435_p5  ;;  %s467_s27 = int_to_ptr.vmem [resolvable:$true] %s98_s27 }
  0x15   : > { %s88_s29 = scalar_lea.sflag [#allocation3], %s87_s20  ;;  %s289_s30 = scalar_lea.hbm %s459_s25, 128 }
  0x16   : > { %p290_p2 = scmp.ne.s32.totalorder %s459_s25, %s289_s30  ;;  %p291_p3 = pneg %p463_p13 }
  0x17   : > { %s294_s4 = scalar_lea.hbm %s537_s0, 256  ;;  %p295_p5 = scmp.lt.s32.totalorder %s459_s25, %s537_s0 }
  0x18   : > { %p292_p4 = pnand %p291_p3, %p290_p2  ;;  %p296_p8 = scmp.lt.s32.totalorder %s294_s4, %s289_s30 }
  0x1a   : > { %p293_p7 = pneg %p292_p4  ;;  %p297_p10 = por %p296_p8, %p295_p5 }
  0x1c   : > { %p298_p9 = pnand %p297_p10, %p293_p7 }
  0x1e   : > { %301 = shalt.err (!%p298_p9)
}
  0x1f   : > { %s302_s13 = scalar_lea.vmem %s467_s27, 128  ;;  %s383_s14 = smov [#allocation2]  }
  0x20   : > { %p303_p0 = scmp.ne.s32.totalorder %s467_s27, %s302_s13  ;;  %s307_s16 = sshll.u32 %s383_s14, 4  ;;  %s308_s16 = int_to_ptr.vmem [resolvable:$false] %s307_s16 }
  0x21   : > { %s309_s20 = scalar_lea.vmem %s308_s16, 256  ;;  %p310_p4 = scmp.lt.s32.totalorder %s467_s27, %s308_s16 }
  0x22   : > { %p305_p1 = pnand %p303_p0, %p291_p3  ;;  %p311_p12 = scmp.lt.s32.totalorder %s309_s20, %s302_s13 }
  0x24   : > { %p306_p2 = pneg %p305_p1  ;;  %p312_p11 = por %p311_p12, %p310_p4 }
  0x26   : > { %p313_p6 = pnand %p312_p11, %p306_p2 }
  0x28   : > { %316 = shalt.err (!%p313_p6)
}
  0x29   : > { %247 = dma.hbm_to_vmem [thread:$0]  (!%p463_p13), %s459_s25, 128, %s467_s27, %s88_s29  }
  0x2a   : > { %p546_p9 = scmp.lt.s32.totalorder %s381_s9, 3  ;;  %p547_p7 = scmp.ge.s32.totalorder %s381_s9, 1 }
  0x2c   : > { %p104_p0 = pnand %p547_p7, %p546_p9 }
  0x2d   : > { %s494_s21 = sand.u32 (!%p104_p0), 1, %s373_s7   ;;  %p548_p6 = scmp.ne.s32.totalorder (!%p104_p0), %s542_s17, 0 }
  0x2e   : > { %107 = sbr.rel (%p104_p0) target bundleno = 203 (0xcb), region = 24  ;;  %s234_s22 = sshll.u32 (!%p104_p0), %s494_s21, 3 }
  0x2f   : > { %s110_s23 = scalar_lea.sflag (!%p104_p0), [#allocation3], %s494_s21  ;;  %s113_s24 = scalar_lea.vmem (!%p104_p0), [#allocation2], %s234_s22 }
  0x33   : > { %360 = dma.done.wait (%p548_p6), %s110_s23, 128  }
  0x34   : > { %362 = vsyncadd (%p548_p6), %s110_s23, 4294967168  ;;  %v132_v0 = vld [vmem:[%s113_s24] sm:$0xff]  ;;  %s384_s25 = smov 96   ;;  %s237_s26 = sshll.u32 %s417_s10, 7  ;;  %vm142_vm0 = vcmask 261120  }
  0x35   : > { %v133_v1 = vmul.f32 0.5, %v132_v0  ;;  %s131_s27 = scalar_lea.vmem [#allocation5], %s234_s22  ;;  %s156_s30 = scalar_lea.hbm %s538_s1, %s237_s26 }
  0x36   : > { %s158_s28 = sshll.u32 %s131_s27, 4  ;;  %s145_s2 = scalar_lea.sflag [#allocation4], %s494_s21  ;;  %s159_s28 = int_to_ptr.vmem [resolvable:$true] %s158_s28 }
  0x37   : > { %287 = vtanh.f32 %v133_v1  ;;  %s317_s3 = scalar_lea.vmem %s159_s28, 128  ;;  %p549_p12 = scmp.ne.s32.totalorder %s543_s18, 0 }
  0x38   : > { %p318_p11 = scmp.ne.s32.totalorder %s159_s28, %s317_s3  ;;  %s385_s4 = smov [#allocation5]  }
  0x39   : > { %s321_s5 = sshll.u32 %s385_s4, 4  ;;  %s322_s5 = int_to_ptr.vmem [resolvable:$false] %s321_s5 }
  0x3a   : > { %p319_p13 = pnand %p318_p11, %p549_p12  ;;  %s323_s10 = scalar_lea.vmem %s322_s5, 256 }
  0x3b   : > { %p324_p3 = scmp.lt.s32.totalorder %s159_s28, %s322_s5  ;;  %p325_p5 = scmp.lt.s32.totalorder %s323_s10, %s317_s3 }
  0x3c   : > { %p320_p1 = pneg %p319_p13 }
  0x3d   : > { %p326_p8 = por %p325_p5, %p324_p3 }
  0x3f   : > { %p327_p10 = pnand %p326_p8, %p320_p1 }
  0x44   : > { %v288_v2 = vpop.eup %287 }
  0x45   : > { %v135_v3 = vadd.f32 1.0, %v288_v2 }
  0x47   : > { %v136_v4 = vmul.f32 0.5, %v135_v3 }
  0x49   : > { %138 = vrot.lane.b32.xlu0 %v136_v4, %s384_s25 }
  0xbb   : > { %v139_v5 = vpop.permute.xlu0 %138 }
  0xbc   : > { %v141_v6 = vmul.f32 %v139_v5, %v132_v0 }
  0xbe   : > { %143 = vst.msk [vmem:[%s131_s27] sm:$0xff] %vm142_vm0, %v141_v6 }
  0xbf   : > { %330 = shalt.err (!%p327_p10)
}
  0xc0   : > { %s331_s11 = scalar_lea.hbm %s156_s30, 128  ;;  %s335_s16 = scalar_lea.hbm %s538_s1, 256 }
  0xc1   : > { %p332_p2 = scmp.ne.s32.totalorder %s156_s30, %s331_s11  ;;  %p336_p7 = scmp.lt.s32.totalorder %s156_s30, %s538_s1 }
  0xc2   : > { %p337_p0 = scmp.lt.s32.totalorder %s335_s16, %s331_s11 }
  0xc3   : > { %p333_p4 = pnand %p332_p2, %p549_p12 }
  0xc4   : > { %p338_p6 = por %p337_p0, %p336_p7 }
  0xc5   : > { %p334_p9 = pneg %p333_p4 }
  0xc7   : > { %p339_p11 = pnand %p338_p6, %p334_p9 }
  0xc9   : > { %342 = shalt.err (!%p339_p11)
}
  0xca   : > { %242 = dma.vmem_to_hbm [thread:$0]  (%p549_p12), %s159_s28, 128, %s156_s30, %s145_s2  }
  0xcb PF: > { %s170_s22 = sand.u32 1, %s369_s6   ;;  %p550_p13 = scmp.ne.s32.totalorder %s544_s19, 0 }
  0xcc   : > { %p551_p1 = scmp.ge.s32.totalorder %s381_s9, 2  ;;  %s171_s23 = scalar_lea.sflag [#allocation4], %s170_s22 }
  0xce   : > { %p249_p3 = pnand %p551_p1, %p550_p13 }
  0xd0   : > { %p250_p5 = pneg %p249_p3 }
  0xd2   : > { %364 = dma.done.wait (%p250_p5), %s171_s23, 128  }
  0xd3   : > { %366 = vsyncadd (%p250_p5), %s171_s23, 4294967168  ;;  %p14_p8 = scmp.ge.s32.totalorder %s421_s12, 4   ;;  %s552_s6 = smov %s373_s7 }
  0xd4   : > { %s553_s7 = smov %s377_s8  ;;  %s554_s8 = smov %s433_s15 }
  0xd5   : > { %s555_s9 = smov %s421_s12  ;;  %16 = sbr.rel (!%p14_p8) target bundleno = 5 (0x5), region = 69 }
  0xda   :  { %176 = vsyncpa [#allocation3], 1 }
  0xdb   :  { %178 = vsyncpa [#allocation3 + $0x1], 1 }
  0xdc   :  { %179 = vsyncpa [#allocation4], 1 }
  0xdd   :  { %181 = vsyncpa [#allocation4 + $0x1], 1 }

</bundles_post_ra>
